<compile_context>
chip_gen: v7x
topology: tpu7x:2x2x1
jax: 0.10.0
libtpu: 0.0.40
codegen_flags: <defaults>
</compile_context>

<pallas_src>
import math

import jax
import jax.numpy as jnp
import numpy as np
from jax.experimental import pallas as pl
from jax.experimental.pallas import tpu as pltpu

# ---- small synthetic config (matches the module layout) ----
B, L, C = 2, 8, 32          # batch, seq len, embed_dim
NH = 4                      # num_heads
HD = C // NH                # head_dim
D = 32                      # cond_dim
HID = round(C * 4.0)        # FFN hidden (mlp_ratio=4.0) -> 128 (lane-dense)
EPS = 1e-6                  # ln_wo_grad eps (LayerNorm(eps=1e-6), no affine)
SCALE = 0.25 / math.sqrt(HD)   # VAR convention for attn_l2_norm=False
SQRT_2_OVER_PI = math.sqrt(2.0 / math.pi)


def _layernorm(x):
    mu = jnp.mean(x, axis=-1, keepdims=True)
    var = jnp.mean((x - mu) ** 2, axis=-1, keepdims=True)
    return (x - mu) * jax.lax.rsqrt(var + EPS)


def _gelu_tanh(x):
    return 0.5 * x * (1.0 + jnp.tanh(SQRT_2_OVER_PI * (x + 0.044715 * x * x * x)))


def adaln_block_kernel(x_ref, ada_ref, bias_ref,
                       wqkv_ref, bqkv_ref,
                       wproj_ref, bproj_ref,
                       wfc1_ref, bfc1_ref,
                       wfc2_ref, bfc2_ref,
                       out_ref):
    x = x_ref[...]                      # (B, L, C) f32 residual stream
    ada = ada_ref[...]                  # (B, 6C) f32, adaLN linear hoisted to wrapper
    attn_bias = bias_ref[...]           # (L, L) f32 additive bias

    def mod(i):                         # (B, 1, C) modulation vector (torch unbind order)
        return ada[:, i * C:(i + 1) * C][:, None, :]

    gamma1, gamma2, scale1, scale2, shift1, shift2 = (
        mod(0), mod(1), mod(2), mod(3), mod(4), mod(5))

    # ---- attention branch ----
    h1 = _layernorm(x) * (scale1 + 1.0) + shift1            # (B, L, C) f32
    h1_2d = h1.reshape(B * L, C).astype(jnp.bfloat16)       # fuse B*L rows for the GEMM
    qkv = jnp.dot(h1_2d, wqkv_ref[...],
                  preferred_element_type=jnp.float32) + bqkv_ref[...]   # (B*L, 3C) f32
    q = qkv[:, 0 * C:1 * C].reshape(B, L, C)
    k = qkv[:, 1 * C:2 * C].reshape(B, L, C)
    v = qkv[:, 2 * C:3 * C].reshape(B, L, C)

    head_outs = []
    for h in range(NH):                 # static head loop, each stage batched over B
        qh = q[:, :, h * HD:(h + 1) * HD].astype(jnp.bfloat16)
        kh = k[:, :, h * HD:(h + 1) * HD].astype(jnp.bfloat16)
        vh = v[:, :, h * HD:(h + 1) * HD].astype(jnp.bfloat16)
        s = jnp.einsum('bqd,bkd->bqk', qh, kh,
                       preferred_element_type=jnp.float32) * SCALE
        s = s + attn_bias[None, :, :]                        # f32 scores + f32 mask
        s = s - jnp.max(s, axis=-1, keepdims=True)
        p = jnp.exp(s)
        inv = pl.reciprocal(jnp.sum(p, axis=-1, keepdims=True), approx=True)
        p = (p * inv).astype(jnp.bfloat16)
        head_outs.append(jnp.einsum('bqk,bkd->bqd', p, vh,
                                    preferred_element_type=jnp.float32))
    oup = jnp.concatenate(head_outs, axis=-1)                # (B, L, C) f32, head-major
    oup_2d = oup.reshape(B * L, C).astype(jnp.bfloat16)
    attn_out = (jnp.dot(oup_2d, wproj_ref[...],
                        preferred_element_type=jnp.float32) + bproj_ref[...])
    x = x + attn_out.reshape(B, L, C) * gamma1

    # ---- FFN branch ----
    h2 = _layernorm(x) * (scale2 + 1.0) + shift2
    h2_2d = h2.reshape(B * L, C).astype(jnp.bfloat16)
    f = jnp.dot(h2_2d, wfc1_ref[...],
                preferred_element_type=jnp.float32) + bfc1_ref[...]     # (B*L, HID) f32
    f = _gelu_tanh(f).astype(jnp.bfloat16)
    f = jnp.dot(f, wfc2_ref[...],
                preferred_element_type=jnp.float32) + bfc2_ref[...]     # (B*L, C) f32
    out_ref[...] = x + f.reshape(B, L, C) * gamma2           # single lane-aligned store


def adaln_self_attn(x, cond, attn_bias, params):
    (wada, bada, wqkv, bqkv, wproj, bproj, wfc1, bfc1, wfc2, bfc2) = params

    # adaLN modulation hoisted out of the kernel: one (B,D)@(D,6C) XLA GEMM in f32.
    c = cond * jax.nn.sigmoid(cond)
    ada = (c @ wada + bada).astype(jnp.float32)              # (B, 6C)

    bf16 = lambda w: w.astype(jnp.bfloat16)                  # MXU-native operands
    vmem = pl.BlockSpec(memory_space=pltpu.MemorySpace.VMEM)  # whole array resident in VMEM

    # Single invocation (no grid): B=2 of real work is far smaller than the
    # per-grid-step overhead; everything fits trivially in VMEM at this size.
    return pl.pallas_call(
        adaln_block_kernel,
        out_shape=jax.ShapeDtypeStruct((B, L, C), jnp.float32),
        in_specs=[vmem] * 11,
        out_specs=vmem,
    )(x, ada, attn_bias,
      bf16(wqkv), bqkv, bf16(wproj), bproj,
      bf16(wfc1), bfc1, bf16(wfc2), bfc2)


def adaln_self_attn_ref(x, cond, attn_bias, params):
    """Pure-JAX reference with identical math (mirrors the PyTorch forward)."""
    (wada, bada, wqkv, bqkv, wproj, bproj, wfc1, bfc1, wfc2, bfc2) = params
    c = cond * jax.nn.sigmoid(cond)
    ada = c @ wada + bada                                    # (B, 6C)
    ada = ada.reshape(B, 1, 6, C)
    gamma1, gamma2, scale1, scale2, shift1, shift2 = [ada[:, :, i, :] for i in range(6)]

    h1 = _layernorm(x) * (scale1 + 1.0) + shift1
    qkv = h1 @ wqkv + bqkv[0]
    qkv = qkv.reshape(B, L, 3, NH, HD)
    q, k, v = [jnp.transpose(qkv[:, :, i], (0, 2, 1, 3)) for i in range(3)]  # (B,NH,L,HD)
    s = jnp.einsum('bhqd,bhkd->bhqk', q, k) * SCALE + attn_bias[None, None]
    p = jax.nn.softmax(s, axis=-1)
    o = jnp.einsum('bhqk,bhkd->bhqd', p, v)
    o = jnp.transpose(o, (0, 2, 1, 3)).reshape(B, L, C)
    attn_out = o @ wproj + bproj[0]
    x = x + attn_out * gamma1

    h2 = _layernorm(x) * (scale2 + 1.0) + shift2
    f = _gelu_tanh(h2 @ wfc1 + bfc1[0]) @ wfc2 + bfc2[0]
    return x + f * gamma2


if __name__ == "__main__":
    key = jax.random.PRNGKey(0)
    ks = jax.random.split(key, 16)

    x = jax.random.normal(ks[0], (B, L, C), jnp.float32)
    cond = jax.random.normal(ks[1], (B, D), jnp.float32)
    # additive causal attention bias (L, L)
    causal = jnp.tril(jnp.ones((L, L), jnp.bool_))
    attn_bias = jnp.where(causal, 0.0, -1e9).astype(jnp.float32)

    # deterministic synthetic weights (shapes from the module __init__), stored (in, out)
    wada = jax.random.normal(ks[2], (D, 6 * C), jnp.float32) * 0.05    # ada_lin Linear
    bada = jax.random.normal(ks[3], (1, 6 * C), jnp.float32) * 0.05
    wqkv = jax.random.normal(ks[4], (C, 3 * C), jnp.float32) * 0.05    # mat_qkv (no bias)
    # qkv bias = cat(q_bias, zero_k_bias, v_bias); give q/v small nonzero values
    q_bias = jax.random.normal(ks[5], (C,), jnp.float32) * 0.05
    v_bias = jax.random.normal(ks[6], (C,), jnp.float32) * 0.05
    bqkv = jnp.concatenate([q_bias, jnp.zeros((C,), jnp.float32), v_bias]).reshape(1, 3 * C)
    wproj = jax.random.normal(ks[7], (C, C), jnp.float32) * 0.05
    bproj = jax.random.normal(ks[8], (1, C), jnp.float32) * 0.05
    wfc1 = jax.random.normal(ks[9], (C, HID), jnp.float32) * 0.05
    bfc1 = jax.random.normal(ks[10], (1, HID), jnp.float32) * 0.05
    wfc2 = jax.random.normal(ks[11], (HID, C), jnp.float32) * 0.05
    bfc2 = jax.random.normal(ks[12], (1, C), jnp.float32) * 0.05

    params = (wada, bada, wqkv, bqkv, wproj, bproj, wfc1, bfc1, wfc2, bfc2)

    out = adaln_self_attn(x, cond, attn_bias, params)
    out = jax.block_until_ready(out)

    ref = adaln_self_attn_ref(x, cond, attn_bias, params)
    np.testing.assert_allclose(np.asarray(out), np.asarray(ref), rtol=2e-2, atol=2e-2)

    print("KERNEL_OK")
</pallas_src>

<mosaic_0001>
module attributes {stable_mosaic.version = 11 : i64} {
  func.func @adaln_block_kernel(%arg0: memref<2x8x32xf32, #tpu.memory_space<vmem>>, %arg1: memref<2x192xf32, #tpu.memory_space<vmem>>, %arg2: memref<8x8xf32, #tpu.memory_space<vmem>>, %arg3: memref<32x96xbf16, #tpu.memory_space<vmem>>, %arg4: memref<1x96xf32, #tpu.memory_space<vmem>>, %arg5: memref<32x32xbf16, #tpu.memory_space<vmem>>, %arg6: memref<1x32xf32, #tpu.memory_space<vmem>>, %arg7: memref<32x128xbf16, #tpu.memory_space<vmem>>, %arg8: memref<1x128xf32, #tpu.memory_space<vmem>>, %arg9: memref<128x32xbf16, #tpu.memory_space<vmem>>, %arg10: memref<1x32xf32, #tpu.memory_space<vmem>>, %arg11: memref<2x8x32xf32, #tpu.memory_space<vmem>>) attributes {dimension_semantics = [], scalar_prefetch = 0 : i64, scratch_operands = 0 : i64, tpu.core_type = #tpu.core_type<tc>} {
    %c0 = arith.constant 0 : index
    %c0_0 = arith.constant 0 : index
    %c0_1 = arith.constant 0 : index
    %0 = vector.load %arg0[%c0, %c0_0, %c0_1] : memref<2x8x32xf32, #tpu.memory_space<vmem>>, vector<2x8x32xf32>
    %c0_2 = arith.constant 0 : index
    %c0_3 = arith.constant 0 : index
    %1 = vector.load %arg1[%c0_2, %c0_3] : memref<2x192xf32, #tpu.memory_space<vmem>>, vector<2x192xf32>
    %c0_4 = arith.constant 0 : index
    %c0_5 = arith.constant 0 : index
    %2 = vector.load %arg2[%c0_4, %c0_5] : memref<8x8xf32, #tpu.memory_space<vmem>>, vector<8x8xf32>
    %3 = vector.extract_strided_slice %1 {offsets = [0, 0], sizes = [2, 32], strides = [1, 1]} : vector<2x192xf32> to vector<2x32xf32>
    %4 = vector.shape_cast %3 : vector<2x32xf32> to vector<2x1x32xf32>
    %5 = vector.extract_strided_slice %1 {offsets = [0, 32], sizes = [2, 32], strides = [1, 1]} : vector<2x192xf32> to vector<2x32xf32>
    %6 = vector.shape_cast %5 : vector<2x32xf32> to vector<2x1x32xf32>
    %7 = vector.extract_strided_slice %1 {offsets = [0, 64], sizes = [2, 32], strides = [1, 1]} : vector<2x192xf32> to vector<2x32xf32>
    %8 = vector.shape_cast %7 : vector<2x32xf32> to vector<2x1x32xf32>
    %9 = vector.extract_strided_slice %1 {offsets = [0, 96], sizes = [2, 32], strides = [1, 1]} : vector<2x192xf32> to vector<2x32xf32>
    %10 = vector.shape_cast %9 : vector<2x32xf32> to vector<2x1x32xf32>
    %11 = vector.extract_strided_slice %1 {offsets = [0, 128], sizes = [2, 32], strides = [1, 1]} : vector<2x192xf32> to vector<2x32xf32>
    %12 = vector.shape_cast %11 : vector<2x32xf32> to vector<2x1x32xf32>
    %13 = vector.extract_strided_slice %1 {offsets = [0, 160], sizes = [2, 32], strides = [1, 1]} : vector<2x192xf32> to vector<2x32xf32>
    %14 = vector.shape_cast %13 : vector<2x32xf32> to vector<2x1x32xf32>
    %cst = arith.constant dense<0.000000e+00> : vector<2x8xf32>
    %15 = vector.multi_reduction <add>, %0, %cst [2] : vector<2x8x32xf32> to vector<2x8xf32>
    %16 = vector.shape_cast %15 : vector<2x8xf32> to vector<2x8x1xf32>
    %cst_6 = arith.constant 3.200000e+01 : f32
    %17 = vector.broadcast %cst_6 : f32 to vector<2x8x1xf32>
    %18 = arith.divf %16, %17 : vector<2x8x1xf32>
    %19 = vector.broadcast %18 : vector<2x8x1xf32> to vector<2x8x32xf32>
    %20 = arith.subf %0, %19 : vector<2x8x32xf32>
    %21 = arith.mulf %20, %20 : vector<2x8x32xf32>
    %cst_7 = arith.constant dense<0.000000e+00> : vector<2x8xf32>
    %22 = vector.multi_reduction <add>, %21, %cst_7 [2] : vector<2x8x32xf32> to vector<2x8xf32>
    %23 = vector.shape_cast %22 : vector<2x8xf32> to vector<2x8x1xf32>
    %cst_8 = arith.constant 3.200000e+01 : f32
    %24 = vector.broadcast %cst_8 : f32 to vector<2x8x1xf32>
    %25 = arith.divf %23, %24 : vector<2x8x1xf32>
    %26 = vector.broadcast %18 : vector<2x8x1xf32> to vector<2x8x32xf32>
    %27 = arith.subf %0, %26 : vector<2x8x32xf32>
    %cst_9 = arith.constant 9.99999997E-7 : f32
    %28 = vector.broadcast %cst_9 : f32 to vector<2x8x1xf32>
    %29 = arith.addf %25, %28 : vector<2x8x1xf32>
    %30 = math.rsqrt %29 : vector<2x8x1xf32>
    %31 = vector.broadcast %30 : vector<2x8x1xf32> to vector<2x8x32xf32>
    %32 = arith.mulf %27, %31 : vector<2x8x32xf32>
    %cst_10 = arith.constant 1.000000e+00 : f32
    %33 = vector.broadcast %cst_10 : f32 to vector<2x1x32xf32>
    %34 = arith.addf %8, %33 : vector<2x1x32xf32>
    %35 = vector.broadcast %34 : vector<2x1x32xf32> to vector<2x8x32xf32>
    %36 = arith.mulf %32, %35 : vector<2x8x32xf32>
    %37 = vector.broadcast %12 : vector<2x1x32xf32> to vector<2x8x32xf32>
    %38 = arith.addf %36, %37 : vector<2x8x32xf32>
    %39 = vector.shape_cast %38 : vector<2x8x32xf32> to vector<16x32xf32>
    %40 = arith.truncf %39 : vector<16x32xf32> to vector<16x32xbf16>
    %c0_11 = arith.constant 0 : index
    %c0_12 = arith.constant 0 : index
    %41 = vector.load %arg3[%c0_11, %c0_12] : memref<32x96xbf16, #tpu.memory_space<vmem>>, vector<32x96xbf16>
    %cst_13 = arith.constant dense<0.000000e+00> : vector<16x96xf32>
    %42 = tpu.matmul %40, %41, %cst_13 {dimension_numbers = #tpu.dot_dimension_numbers<[1], [0], [0], [1], [0, 0, 1, 1], [], []>} : vector<16x32xbf16>, vector<32x96xbf16>, vector<16x96xf32> -> vector<16x96xf32>
    %c0_14 = arith.constant 0 : index
    %c0_15 = arith.constant 0 : index
    %43 = vector.load %arg4[%c0_14, %c0_15] : memref<1x96xf32, #tpu.memory_space<vmem>>, vector<1x96xf32>
    %44 = vector.broadcast %43 : vector<1x96xf32> to vector<16x96xf32>
    %45 = arith.addf %42, %44 : vector<16x96xf32>
    %46 = vector.extract_strided_slice %45 {offsets = [0, 0], sizes = [16, 32], strides = [1, 1]} : vector<16x96xf32> to vector<16x32xf32>
    %47 = vector.shape_cast %46 : vector<16x32xf32> to vector<2x8x32xf32>
    %48 = vector.extract_strided_slice %45 {offsets = [0, 32], sizes = [16, 32], strides = [1, 1]} : vector<16x96xf32> to vector<16x32xf32>
    %49 = vector.shape_cast %48 : vector<16x32xf32> to vector<2x8x32xf32>
    %50 = vector.extract_strided_slice %45 {offsets = [0, 64], sizes = [16, 32], strides = [1, 1]} : vector<16x96xf32> to vector<16x32xf32>
    %51 = vector.shape_cast %50 : vector<16x32xf32> to vector<2x8x32xf32>
    %52 = vector.extract_strided_slice %47 {offsets = [0, 0, 0], sizes = [2, 8, 8], strides = [1, 1, 1]} : vector<2x8x32xf32> to vector<2x8x8xf32>
    %53 = arith.truncf %52 : vector<2x8x8xf32> to vector<2x8x8xbf16>
    %54 = vector.extract_strided_slice %49 {offsets = [0, 0, 0], sizes = [2, 8, 8], strides = [1, 1, 1]} : vector<2x8x32xf32> to vector<2x8x8xf32>
    %55 = arith.truncf %54 : vector<2x8x8xf32> to vector<2x8x8xbf16>
    %56 = vector.extract_strided_slice %51 {offsets = [0, 0, 0], sizes = [2, 8, 8], strides = [1, 1, 1]} : vector<2x8x32xf32> to vector<2x8x8xf32>
    %57 = arith.truncf %56 : vector<2x8x8xf32> to vector<2x8x8xbf16>
    "tpu.trace_start"() <{level = 10 : i32, message = "bqd,bkd->bqk"}> : () -> ()
    %cst_16 = arith.constant dense<0.000000e+00> : vector<2x8x8xf32>
    %58 = tpu.matmul %53, %55, %cst_16 {dimension_numbers = #tpu.dot_dimension_numbers<[2], [2], [1], [1], [0, 0, 0, 1, 1, 1], [0], [0]>} : vector<2x8x8xbf16>, vector<2x8x8xbf16>, vector<2x8x8xf32> -> vector<2x8x8xf32>
    "tpu.trace_stop"() : () -> ()
    %cst_17 = arith.constant 0.0883883461 : f32
    %59 = vector.broadcast %cst_17 : f32 to vector<2x8x8xf32>
    %60 = arith.mulf %58, %59 : vector<2x8x8xf32>
    %61 = vector.shape_cast %2 : vector<8x8xf32> to vector<1x8x8xf32>
    %62 = vector.broadcast %61 : vector<1x8x8xf32> to vector<2x8x8xf32>
    %63 = arith.addf %60, %62 : vector<2x8x8xf32>
    %cst_18 = arith.constant dense<0xFF800000> : vector<2x8xf32>
    %64 = vector.multi_reduction <maximumf>, %63, %cst_18 [2] : vector<2x8x8xf32> to vector<2x8xf32>
    %65 = vector.shape_cast %64 : vector<2x8xf32> to vector<2x8x1xf32>
    %66 = vector.broadcast %65 : vector<2x8x1xf32> to vector<2x8x8xf32>
    %67 = arith.subf %63, %66 : vector<2x8x8xf32>
    %68 = math.exp %67 : vector<2x8x8xf32>
    %cst_19 = arith.constant dense<0.000000e+00> : vector<2x8xf32>
    %69 = vector.multi_reduction <add>, %68, %cst_19 [2] : vector<2x8x8xf32> to vector<2x8xf32>
    %70 = vector.shape_cast %69 : vector<2x8xf32> to vector<2x8x1xf32>
    %71 = tpu.reciprocal %70 {approx = true} : vector<2x8x1xf32> -> vector<2x8x1xf32>
    %72 = vector.broadcast %71 : vector<2x8x1xf32> to vector<2x8x8xf32>
    %73 = arith.mulf %68, %72 : vector<2x8x8xf32>
    %74 = arith.truncf %73 : vector<2x8x8xf32> to vector<2x8x8xbf16>
    "tpu.trace_start"() <{level = 10 : i32, message = "bqk,bkd->bqd"}> : () -> ()
    %cst_20 = arith.constant dense<0.000000e+00> : vector<2x8x8xf32>
    %75 = tpu.matmul %74, %57, %cst_20 {dimension_numbers = #tpu.dot_dimension_numbers<[2], [1], [1], [2], [0, 0, 0, 1, 1, 2], [0], [0]>} : vector<2x8x8xbf16>, vector<2x8x8xbf16>, vector<2x8x8xf32> -> vector<2x8x8xf32>
    "tpu.trace_stop"() : () -> ()
    %76 = vector.extract_strided_slice %47 {offsets = [0, 0, 8], sizes = [2, 8, 8], strides = [1, 1, 1]} : vector<2x8x32xf32> to vector<2x8x8xf32>
    %77 = arith.truncf %76 : vector<2x8x8xf32> to vector<2x8x8xbf16>
    %78 = vector.extract_strided_slice %49 {offsets = [0, 0, 8], sizes = [2, 8, 8], strides = [1, 1, 1]} : vector<2x8x32xf32> to vector<2x8x8xf32>
    %79 = arith.truncf %78 : vector<2x8x8xf32> to vector<2x8x8xbf16>
    %80 = vector.extract_strided_slice %51 {offsets = [0, 0, 8], sizes = [2, 8, 8], strides = [1, 1, 1]} : vector<2x8x32xf32> to vector<2x8x8xf32>
    %81 = arith.truncf %80 : vector<2x8x8xf32> to vector<2x8x8xbf16>
    "tpu.trace_start"() <{level = 10 : i32, message = "bqd,bkd->bqk"}> : () -> ()
    %cst_21 = arith.constant dense<0.000000e+00> : vector<2x8x8xf32>
    %82 = tpu.matmul %77, %79, %cst_21 {dimension_numbers = #tpu.dot_dimension_numbers<[2], [2], [1], [1], [0, 0, 0, 1, 1, 1], [0], [0]>} : vector<2x8x8xbf16>, vector<2x8x8xbf16>, vector<2x8x8xf32> -> vector<2x8x8xf32>
    "tpu.trace_stop"() : () -> ()
    %cst_22 = arith.constant 0.0883883461 : f32
    %83 = vector.broadcast %cst_22 : f32 to vector<2x8x8xf32>
    %84 = arith.mulf %82, %83 : vector<2x8x8xf32>
    %85 = vector.shape_cast %2 : vector<8x8xf32> to vector<1x8x8xf32>
    %86 = vector.broadcast %85 : vector<1x8x8xf32> to vector<2x8x8xf32>
    %87 = arith.addf %84, %86 : vector<2x8x8xf32>
    %cst_23 = arith.constant dense<0xFF800000> : vector<2x8xf32>
    %88 = vector.multi_reduction <maximumf>, %87, %cst_23 [2] : vector<2x8x8xf32> to vector<2x8xf32>
    %89 = vector.shape_cast %88 : vector<2x8xf32> to vector<2x8x1xf32>
    %90 = vector.broadcast %89 : vector<2x8x1xf32> to vector<2x8x8xf32>
    %91 = arith.subf %87, %90 : vector<2x8x8xf32>
    %92 = math.exp %91 : vector<2x8x8xf32>
    %cst_24 = arith.constant dense<0.000000e+00> : vector<2x8xf32>
    %93 = vector.multi_reduction <add>, %92, %cst_24 [2] : vector<2x8x8xf32> to vector<2x8xf32>
    %94 = vector.shape_cast %93 : vector<2x8xf32> to vector<2x8x1xf32>
    %95 = tpu.reciprocal %94 {approx = true} : vector<2x8x1xf32> -> vector<2x8x1xf32>
    %96 = vector.broadcast %95 : vector<2x8x1xf32> to vector<2x8x8xf32>
    %97 = arith.mulf %92, %96 : vector<2x8x8xf32>
    %98 = arith.truncf %97 : vector<2x8x8xf32> to vector<2x8x8xbf16>
    "tpu.trace_start"() <{level = 10 : i32, message = "bqk,bkd->bqd"}> : () -> ()
    %cst_25 = arith.constant dense<0.000000e+00> : vector<2x8x8xf32>
    %99 = tpu.matmul %98, %81, %cst_25 {dimension_numbers = #tpu.dot_dimension_numbers<[2], [1], [1], [2], [0, 0, 0, 1, 1, 2], [0], [0]>} : vector<2x8x8xbf16>, vector<2x8x8xbf16>, vector<2x8x8xf32> -> vector<2x8x8xf32>
    "tpu.trace_stop"() : () -> ()
    %100 = vector.extract_strided_slice %47 {offsets = [0, 0, 16], sizes = [2, 8, 8], strides = [1, 1, 1]} : vector<2x8x32xf32> to vector<2x8x8xf32>
    %101 = arith.truncf %100 : vector<2x8x8xf32> to vector<2x8x8xbf16>
    %102 = vector.extract_strided_slice %49 {offsets = [0, 0, 16], sizes = [2, 8, 8], strides = [1, 1, 1]} : vector<2x8x32xf32> to vector<2x8x8xf32>
    %103 = arith.truncf %102 : vector<2x8x8xf32> to vector<2x8x8xbf16>
    %104 = vector.extract_strided_slice %51 {offsets = [0, 0, 16], sizes = [2, 8, 8], strides = [1, 1, 1]} : vector<2x8x32xf32> to vector<2x8x8xf32>
    %105 = arith.truncf %104 : vector<2x8x8xf32> to vector<2x8x8xbf16>
    "tpu.trace_start"() <{level = 10 : i32, message = "bqd,bkd->bqk"}> : () -> ()
    %cst_26 = arith.constant dense<0.000000e+00> : vector<2x8x8xf32>
    %106 = tpu.matmul %101, %103, %cst_26 {dimension_numbers = #tpu.dot_dimension_numbers<[2], [2], [1], [1], [0, 0, 0, 1, 1, 1], [0], [0]>} : vector<2x8x8xbf16>, vector<2x8x8xbf16>, vector<2x8x8xf32> -> vector<2x8x8xf32>
    "tpu.trace_stop"() : () -> ()
    %cst_27 = arith.constant 0.0883883461 : f32
    %107 = vector.broadcast %cst_27 : f32 to vector<2x8x8xf32>
    %108 = arith.mulf %106, %107 : vector<2x8x8xf32>
    %109 = vector.shape_cast %2 : vector<8x8xf32> to vector<1x8x8xf32>
    %110 = vector.broadcast %109 : vector<1x8x8xf32> to vector<2x8x8xf32>
    %111 = arith.addf %108, %110 : vector<2x8x8xf32>
    %cst_28 = arith.constant dense<0xFF800000> : vector<2x8xf32>
    %112 = vector.multi_reduction <maximumf>, %111, %cst_28 [2] : vector<2x8x8xf32> to vector<2x8xf32>
    %113 = vector.shape_cast %112 : vector<2x8xf32> to vector<2x8x1xf32>
    %114 = vector.broadcast %113 : vector<2x8x1xf32> to vector<2x8x8xf32>
    %115 = arith.subf %111, %114 : vector<2x8x8xf32>
    %116 = math.exp %115 : vector<2x8x8xf32>
    %cst_29 = arith.constant dense<0.000000e+00> : vector<2x8xf32>
    %117 = vector.multi_reduction <add>, %116, %cst_29 [2] : vector<2x8x8xf32> to vector<2x8xf32>
    %118 = vector.shape_cast %117 : vector<2x8xf32> to vector<2x8x1xf32>
    %119 = tpu.reciprocal %118 {approx = true} : vector<2x8x1xf32> -> vector<2x8x1xf32>
    %120 = vector.broadcast %119 : vector<2x8x1xf32> to vector<2x8x8xf32>
    %121 = arith.mulf %116, %120 : vector<2x8x8xf32>
    %122 = arith.truncf %121 : vector<2x8x8xf32> to vector<2x8x8xbf16>
    "tpu.trace_start"() <{level = 10 : i32, message = "bqk,bkd->bqd"}> : () -> ()
    %cst_30 = arith.constant dense<0.000000e+00> : vector<2x8x8xf32>
    %123 = tpu.matmul %122, %105, %cst_30 {dimension_numbers = #tpu.dot_dimension_numbers<[2], [1], [1], [2], [0, 0, 0, 1, 1, 2], [0], [0]>} : vector<2x8x8xbf16>, vector<2x8x8xbf16>, vector<2x8x8xf32> -> vector<2x8x8xf32>
    "tpu.trace_stop"() : () -> ()
    %124 = vector.extract_strided_slice %47 {offsets = [0, 0, 24], sizes = [2, 8, 8], strides = [1, 1, 1]} : vector<2x8x32xf32> to vector<2x8x8xf32>
    %125 = arith.truncf %124 : vector<2x8x8xf32> to vector<2x8x8xbf16>
    %126 = vector.extract_strided_slice %49 {offsets = [0, 0, 24], sizes = [2, 8, 8], strides = [1, 1, 1]} : vector<2x8x32xf32> to vector<2x8x8xf32>
    %127 = arith.truncf %126 : vector<2x8x8xf32> to vector<2x8x8xbf16>
    %128 = vector.extract_strided_slice %51 {offsets = [0, 0, 24], sizes = [2, 8, 8], strides = [1, 1, 1]} : vector<2x8x32xf32> to vector<2x8x8xf32>
    %129 = arith.truncf %128 : vector<2x8x8xf32> to vector<2x8x8xbf16>
    "tpu.trace_start"() <{level = 10 : i32, message = "bqd,bkd->bqk"}> : () -> ()
    %cst_31 = arith.constant dense<0.000000e+00> : vector<2x8x8xf32>
    %130 = tpu.matmul %125, %127, %cst_31 {dimension_numbers = #tpu.dot_dimension_numbers<[2], [2], [1], [1], [0, 0, 0, 1, 1, 1], [0], [0]>} : vector<2x8x8xbf16>, vector<2x8x8xbf16>, vector<2x8x8xf32> -> vector<2x8x8xf32>
    "tpu.trace_stop"() : () -> ()
    %cst_32 = arith.constant 0.0883883461 : f32
    %131 = vector.broadcast %cst_32 : f32 to vector<2x8x8xf32>
    %132 = arith.mulf %130, %131 : vector<2x8x8xf32>
    %133 = vector.shape_cast %2 : vector<8x8xf32> to vector<1x8x8xf32>
    %134 = vector.broadcast %133 : vector<1x8x8xf32> to vector<2x8x8xf32>
    %135 = arith.addf %132, %134 : vector<2x8x8xf32>
    %cst_33 = arith.constant dense<0xFF800000> : vector<2x8xf32>
    %136 = vector.multi_reduction <maximumf>, %135, %cst_33 [2] : vector<2x8x8xf32> to vector<2x8xf32>
    %137 = vector.shape_cast %136 : vector<2x8xf32> to vector<2x8x1xf32>
    %138 = vector.broadcast %137 : vector<2x8x1xf32> to vector<2x8x8xf32>
    %139 = arith.subf %135, %138 : vector<2x8x8xf32>
    %140 = math.exp %139 : vector<2x8x8xf32>
    %cst_34 = arith.constant dense<0.000000e+00> : vector<2x8xf32>
    %141 = vector.multi_reduction <add>, %140, %cst_34 [2] : vector<2x8x8xf32> to vector<2x8xf32>
    %142 = vector.shape_cast %141 : vector<2x8xf32> to vector<2x8x1xf32>
    %143 = tpu.reciprocal %142 {approx = true} : vector<2x8x1xf32> -> vector<2x8x1xf32>
    %144 = vector.broadcast %143 : vector<2x8x1xf32> to vector<2x8x8xf32>
    %145 = arith.mulf %140, %144 : vector<2x8x8xf32>
    %146 = arith.truncf %145 : vector<2x8x8xf32> to vector<2x8x8xbf16>
    "tpu.trace_start"() <{level = 10 : i32, message = "bqk,bkd->bqd"}> : () -> ()
    %cst_35 = arith.constant dense<0.000000e+00> : vector<2x8x8xf32>
    %147 = tpu.matmul %146, %129, %cst_35 {dimension_numbers = #tpu.dot_dimension_numbers<[2], [1], [1], [2], [0, 0, 0, 1, 1, 2], [0], [0]>} : vector<2x8x8xbf16>, vector<2x8x8xbf16>, vector<2x8x8xf32> -> vector<2x8x8xf32>
    "tpu.trace_stop"() : () -> ()
    %148 = tpu.concatenate %75, %99, %123, %147 in 2 : vector<2x8x8xf32>, vector<2x8x8xf32>, vector<2x8x8xf32>, vector<2x8x8xf32> -> vector<2x8x32xf32>
    %149 = vector.shape_cast %148 : vector<2x8x32xf32> to vector<16x32xf32>
    %150 = arith.truncf %149 : vector<16x32xf32> to vector<16x32xbf16>
    %c0_36 = arith.constant 0 : index
    %c0_37 = arith.constant 0 : index
    %151 = vector.load %arg5[%c0_36, %c0_37] : memref<32x32xbf16, #tpu.memory_space<vmem>>, vector<32x32xbf16>
    %cst_38 = arith.constant dense<0.000000e+00> : vector<16x32xf32>
    %152 = tpu.matmul %150, %151, %cst_38 {dimension_numbers = #tpu.dot_dimension_numbers<[1], [0], [0], [1], [0, 0, 1, 1], [], []>} : vector<16x32xbf16>, vector<32x32xbf16>, vector<16x32xf32> -> vector<16x32xf32>
    %c0_39 = arith.constant 0 : index
    %c0_40 = arith.constant 0 : index
    %153 = vector.load %arg6[%c0_39, %c0_40] : memref<1x32xf32, #tpu.memory_space<vmem>>, vector<1x32xf32>
    %154 = vector.broadcast %153 : vector<1x32xf32> to vector<16x32xf32>
    %155 = arith.addf %152, %154 : vector<16x32xf32>
    %156 = vector.shape_cast %155 : vector<16x32xf32> to vector<2x8x32xf32>
    %157 = vector.broadcast %4 : vector<2x1x32xf32> to vector<2x8x32xf32>
    %158 = arith.mulf %156, %157 : vector<2x8x32xf32>
    %159 = arith.addf %0, %158 : vector<2x8x32xf32>
    %cst_41 = arith.constant dense<0.000000e+00> : vector<2x8xf32>
    %160 = vector.multi_reduction <add>, %159, %cst_41 [2] : vector<2x8x32xf32> to vector<2x8xf32>
    %161 = vector.shape_cast %160 : vector<2x8xf32> to vector<2x8x1xf32>
    %cst_42 = arith.constant 3.200000e+01 : f32
    %162 = vector.broadcast %cst_42 : f32 to vector<2x8x1xf32>
    %163 = arith.divf %161, %162 : vector<2x8x1xf32>
    %164 = vector.broadcast %163 : vector<2x8x1xf32> to vector<2x8x32xf32>
    %165 = arith.subf %159, %164 : vector<2x8x32xf32>
    %166 = arith.mulf %165, %165 : vector<2x8x32xf32>
    %cst_43 = arith.constant dense<0.000000e+00> : vector<2x8xf32>
    %167 = vector.multi_reduction <add>, %166, %cst_43 [2] : vector<2x8x32xf32> to vector<2x8xf32>
    %168 = vector.shape_cast %167 : vector<2x8xf32> to vector<2x8x1xf32>
    %cst_44 = arith.constant 3.200000e+01 : f32
    %169 = vector.broadcast %cst_44 : f32 to vector<2x8x1xf32>
    %170 = arith.divf %168, %169 : vector<2x8x1xf32>
    %171 = vector.broadcast %163 : vector<2x8x1xf32> to vector<2x8x32xf32>
    %172 = arith.subf %159, %171 : vector<2x8x32xf32>
    %cst_45 = arith.constant 9.99999997E-7 : f32
    %173 = vector.broadcast %cst_45 : f32 to vector<2x8x1xf32>
    %174 = arith.addf %170, %173 : vector<2x8x1xf32>
    %175 = math.rsqrt %174 : vector<2x8x1xf32>
    %176 = vector.broadcast %175 : vector<2x8x1xf32> to vector<2x8x32xf32>
    %177 = arith.mulf %172, %176 : vector<2x8x32xf32>
    %cst_46 = arith.constant 1.000000e+00 : f32
    %178 = vector.broadcast %cst_46 : f32 to vector<2x1x32xf32>
    %179 = arith.addf %10, %178 : vector<2x1x32xf32>
    %180 = vector.broadcast %179 : vector<2x1x32xf32> to vector<2x8x32xf32>
    %181 = arith.mulf %177, %180 : vector<2x8x32xf32>
    %182 = vector.broadcast %14 : vector<2x1x32xf32> to vector<2x8x32xf32>
    %183 = arith.addf %181, %182 : vector<2x8x32xf32>
    %184 = vector.shape_cast %183 : vector<2x8x32xf32> to vector<16x32xf32>
    %185 = arith.truncf %184 : vector<16x32xf32> to vector<16x32xbf16>
    %c0_47 = arith.constant 0 : index
    %c0_48 = arith.constant 0 : index
    %186 = vector.load %arg7[%c0_47, %c0_48] : memref<32x128xbf16, #tpu.memory_space<vmem>>, vector<32x128xbf16>
    %cst_49 = arith.constant dense<0.000000e+00> : vector<16x128xf32>
    %187 = tpu.matmul %185, %186, %cst_49 {dimension_numbers = #tpu.dot_dimension_numbers<[1], [0], [0], [1], [0, 0, 1, 1], [], []>} : vector<16x32xbf16>, vector<32x128xbf16>, vector<16x128xf32> -> vector<16x128xf32>
    %c0_50 = arith.constant 0 : index
    %c0_51 = arith.constant 0 : index
    %188 = vector.load %arg8[%c0_50, %c0_51] : memref<1x128xf32, #tpu.memory_space<vmem>>, vector<1x128xf32>
    %189 = vector.broadcast %188 : vector<1x128xf32> to vector<16x128xf32>
    %190 = arith.addf %187, %189 : vector<16x128xf32>
    %cst_52 = arith.constant 5.000000e-01 : f32
    %191 = vector.broadcast %cst_52 : f32 to vector<16x128xf32>
    %192 = arith.mulf %191, %190 : vector<16x128xf32>
    %cst_53 = arith.constant 4.471500e-02 : f32
    %193 = vector.broadcast %cst_53 : f32 to vector<16x128xf32>
    %194 = arith.mulf %193, %190 : vector<16x128xf32>
    %195 = arith.mulf %194, %190 : vector<16x128xf32>
    %196 = arith.mulf %195, %190 : vector<16x128xf32>
    %197 = arith.addf %190, %196 : vector<16x128xf32>
    %cst_54 = arith.constant 0.797884583 : f32
    %198 = vector.broadcast %cst_54 : f32 to vector<16x128xf32>
    %199 = arith.mulf %198, %197 : vector<16x128xf32>
    %200 = math.tanh %199 : vector<16x128xf32>
    %cst_55 = arith.constant 1.000000e+00 : f32
    %201 = vector.broadcast %cst_55 : f32 to vector<16x128xf32>
    %202 = arith.addf %201, %200 : vector<16x128xf32>
    %203 = arith.mulf %192, %202 : vector<16x128xf32>
    %204 = arith.truncf %203 : vector<16x128xf32> to vector<16x128xbf16>
    %c0_56 = arith.constant 0 : index
    %c0_57 = arith.constant 0 : index
    %205 = vector.load %arg9[%c0_56, %c0_57] : memref<128x32xbf16, #tpu.memory_space<vmem>>, vector<128x32xbf16>
    %cst_58 = arith.constant dense<0.000000e+00> : vector<16x32xf32>
    %206 = tpu.matmul %204, %205, %cst_58 {dimension_numbers = #tpu.dot_dimension_numbers<[1], [0], [0], [1], [0, 0, 1, 1], [], []>} : vector<16x128xbf16>, vector<128x32xbf16>, vector<16x32xf32> -> vector<16x32xf32>
    %c0_59 = arith.constant 0 : index
    %c0_60 = arith.constant 0 : index
    %207 = vector.load %arg10[%c0_59, %c0_60] : memref<1x32xf32, #tpu.memory_space<vmem>>, vector<1x32xf32>
    %208 = vector.broadcast %207 : vector<1x32xf32> to vector<16x32xf32>
    %209 = arith.addf %206, %208 : vector<16x32xf32>
    %210 = vector.shape_cast %209 : vector<16x32xf32> to vector<2x8x32xf32>
    %211 = vector.broadcast %6 : vector<2x1x32xf32> to vector<2x8x32xf32>
    %212 = arith.mulf %210, %211 : vector<2x8x32xf32>
    %213 = arith.addf %159, %212 : vector<2x8x32xf32>
    %c0_61 = arith.constant 0 : index
    %c0_62 = arith.constant 0 : index
    %c0_63 = arith.constant 0 : index
    %214 = vector.load %arg11[%c0_61, %c0_62, %c0_63] : memref<2x8x32xf32, #tpu.memory_space<vmem>>, vector<2x8x32xf32>
    tpu.vector_store %arg11[%c0_61, %c0_62, %c0_63], %213 {strides = array<i32>} : memref<2x8x32xf32, #tpu.memory_space<vmem>>, vector<2x8x32xf32>,
    return
  }
}

</mosaic_0001>

<bundles_post_ra>
// kernel: tpu_custom_call.1
= control target key start
LH: loop header
LB: loop body
LE: loop exit
PB: predicated region body
PF: predicated region fallthrough
CT: control target
= control target key end

     0   :  { %vm63_vm0 = vcmask 261120   ;;  %s2227_s0 = inlined_call_operand.vmem [shape: f32[2,8,32], index: 0, kind: input, shape index: {}]   ;;  %s2228_s1 = inlined_call_operand.vmem [shape: f32[2,192], index: 1, kind: input, shape index: {}]   ;;  %s2229_s2 = inlined_call_operand.vmem [shape: f32[8,8], index: 2, kind: input, shape index: {}]   ;;  %s2230_s3 = inlined_call_operand.vmem [shape: bf16[32,96], index: 3, kind: input, shape index: {}]   ;;  %s2231_s4 = inlined_call_operand.vmem [shape: f32[1,96], index: 4, kind: input, shape index: {}]   ;;  %s2232_s5 = inlined_call_operand.vmem [shape: bf16[32,32], index: 5, kind: input, shape index: {}]   ;;  %s2233_s6 = inlined_call_operand.vmem [shape: f32[1,32], index: 6, kind: input, shape index: {}]   ;;  %s2234_s7 = inlined_call_operand.vmem [shape: bf16[32,128], index: 7, kind: input, shape index: {}]   ;;  %s2235_s8 = inlined_call_operand.vmem [shape: f32[1,128], index: 8, kind: input, shape index: {}]   ;;  %s2236_s9 = inlined_call_operand.vmem [shape: bf16[128,32], index: 9, kind: input, shape index: {}]   ;;  %s2237_s10 = inlined_call_operand.vmem [shape: f32[1,32], index: 10, kind: input, shape index: {}]   ;;  %s2238_s11 = inlined_call_operand.hbm [shape: f32[2,8,32], index: 11, kind: output, shape index: {}]  }
   0x1   :  { %v1902_v0 = vld [vmem:[%s2227_s0] sm:$0xff]  ;;  %v1907_v1 = vld [vmem:[%s2227_s0 + $0x8] sm:$0xff] }
   0x2   :  { %v64_v2 = vsel %vm63_vm0, %v1902_v0, 0.0  ;;  %v67_v3 = vsel %vm63_vm0, %v1907_v1, 0.0 }
   0x3   :  { %65 = vadd.xlane.f32.xlu0 %v64_v2 }
   0x7   :  { %68 = vadd.xlane.f32.xlu0 %v67_v3 }
   0x8   :  { %16 = vsyncpa [#allocation3], 0  ;;  %v1916_v4 = vld.sshfl [vmem:[%s2228_s1] sm:$0x33 pattern:$0x75316420]  ;;  %v95_v5 = vlaneseq }
   0x9   :  { %v91_v6 = vadd.f32 1.0, %v1916_v4  ;;  %s1820_s0 = smov 64   ;;  %v1932_v20 = vcombine.high %v1916_v4, %v1916_v4  ;;  %v1738_v23 = vld [vmem:[%s2230_s3] sm:$0xff]   ;;  %v1821_v24 = vmov 0.0   ;;  %v1739_v25 = vld [vmem:[%s2230_s3 + $0x8] sm:$0xff]   ;;  %vm1822_vm1 = vmmov 0  }
   0xa   :  { %v96_v7 = vshrl.u32 %v95_v5, 7  ;;  %1564 = vmatprep.subr.bf16.mxu0 %v1821_v24  ;;  %1584 = vmatprep.subr.bf16.mxu1 %v1821_v24  ;;  %v55_v33 = vrot.slane %v1916_v4, 1  ;;  %v1477_v47 = vld [vmem:[%s2231_s4] ss:$0 sm:$0xff]  ;;  %s1823_s27 = smov 96   ;;  %vm196_vm2 = vcmask 64512  }
   0xb   :  { %v92_v21 = vadd.f32 1.0, %v1932_v20  ;;  %1565 = vmatpush3.bf16.msra.mxu0 %v1738_v23  ;;  %1568 = vmatprep.mubr.msk.bf16.mxu0 %vm1822_vm1, %v1821_v24  ;;  %v56_v35 = vrot.slane %v1932_v20, 1  ;;  %v1987_v61 = vld [vmem:[%s2229_s2] sm:$0xff]  ;;  %s1824_s2 = smov 88   ;;  %s1825_s29 = smov 120   ;;  %vm325_vm3 = vcmask 1043456  }
   0xc   :  { %v1919_v8 = vsub.s32 0, %v96_v7  ;;  %1566 = vmatprep.subr.bf16.mxu0 %v1821_v24  ;;  %1586 = vmatprep.mubr.msk.bf16.mxu1 %vm1822_vm1, %v1821_v24  ;;  %s1826_s30 = smov 56   ;;  %s1827_s12 = smov 80   ;;  %vm1115_vm4 = vcmask 130048   ;;  %vm1118_vm5 = vcmask 195584  }
   0xd   :  { %s1828_s13 = smov 112   ;;  %s1829_s14 = smov 48  }
   0xe   :  { %v1922_v9 = vrot.slane %v91_v6, %v1919_v8  ;;  %v1936_v22 = vrot.slane %v92_v21, %v1919_v8  ;;  %v114_v39 = vrot.slane %v55_v33, %v1919_v8  ;;  %v118_v42 = vrot.slane %v56_v35, %v1919_v8  ;;  %s1830_s15 = smov 72   ;;  %s1831_s16 = smov 104  }
   0xf   :  { %1567 = vmatpush3.bf16.msra.mxu0 %v1739_v25  ;;  %s1832_s17 = smov 40   ;;  %s1833_s18 = smov 8  }
  0x10   :  { %1572 = vmatprep.subr.bf16.mxu0 %v1821_v24  ;;  %s1834_s19 = smov 16   ;;  %s1835_s1 = smov 24  }
  0x1d   :  { %103 = vrot.lane.b32.xlu0 %v1922_v9, %s1820_s0 }
  0x90   :  { %v66_v10 = vpop.xlane.xlu0 %65 }
  0x91   :  { %v71_v11 = vmul.f32 0.03125, %v66_v10 }
  0x93   :  { %v73_v12 = vsub.f32 %v1902_v0, %v71_v11 }
  0x94   :  { %v69_v13 = vpop.xlane.xlu0 %68 }
  0x95   :  { %v72_v14 = vmul.f32 0.03125, %v69_v13  ;;  %v75_v15 = vmul.f32 %v73_v12, %v73_v12 }
  0x97   :  { %v74_v16 = vsub.f32 %v1907_v1, %v72_v14  ;;  %v77_v17 = vsel %vm63_vm0, %v75_v15, 0.0 }
  0x98   :  { %78 = vadd.xlane.f32.xlu1 %v77_v17  ;;  %v104_v36 = vpop.permute.xlu0 %103 }
  0x99   :  { %v76_v18 = vmul.f32 %v74_v16, %v74_v16 }
  0x9b   :  { %v80_v19 = vsel %vm63_vm0, %v76_v18, 0.0 }
  0x9c   :  { %81 = vadd.xlane.f32.xlu1 %v80_v19 }
  0xad   :  { %105 = vrot.lane.b32.xlu1 %v1936_v22, %s1820_s0 }
 0x125   :  { %v79_v26 = vpop.xlane.xlu1 %78 }
 0x126   :  { %v83_v27 = vmul.f32 0.03125, %v79_v26 }
 0x128   :  { %v85_v28 = vadd.f32 1e-06, %v83_v27 }
 0x129   :  { %v82_v29 = vpop.xlane.xlu1 %81 }
 0x12a   :  { %1752 = vrsqrt.f32 %v85_v28  ;;  %v84_v30 = vmul.f32 0.03125, %v82_v29 }
 0x12c   :  { %v86_v31 = vadd.f32 1e-06, %v84_v30 }
 0x12d   :  { %v106_v38 = vpop.permute.xlu1 %105 }
 0x12e   :  { %1754 = vrsqrt.f32 %v86_v31 }
 0x134   :  { %v1753_v32 = vpop.eup %1752 }
 0x135   :  { %v89_v34 = vmul.f32 %v1753_v32, %v73_v12 }
 0x137   :  { %v109_v40 = vmul.f32 %v104_v36, %v89_v34 }
 0x138   :  { %v1755_v37 = vpop.eup %1754 }
 0x139   :  { %v90_v41 = vmul.f32 %v1755_v37, %v74_v16  ;;  %v121_v44 = vadd.f32 %v114_v39, %v109_v40 }
 0x13b   :  { %v110_v43 = vmul.f32 %v106_v38, %v90_v41 }
 0x13d   :  { %v122_v45 = vadd.f32 %v118_v42, %v110_v43 }
 0x13f   :  { %v123_v46 = vpack.c.bf16 %v122_v45, %v121_v44 }
 0x141   :  { %1569 = vmatmul.mubr.msk.bf16.vlgmr.msra.gmra.mrb[0].mxu0 %vm63_vm0, %v123_v46 }
 0x142   :  { %1574 = vmatprep.mubr.msk.bf16.mxu0 %vm1822_vm1, %v1821_v24 }
 0x214   :  { %v184_v48 = vpop.f32.mrb[0].mxu0 }
 0x215   :  { %v185_v49 = vadd.f32 %v1477_v47, %v184_v48  ;;  %v1570_v50 = vpop.f32.mrb[1].mxu0 }
 0x216   :  { %v187_v51 = vpop.f32.mrb[2].mxu0 }
 0x217   :  { %v1964_v52 = vpack.c.bf16 %v185_v49, %v185_v49  ;;  %v188_v53 = vadd.f32 %v1477_v47, %v187_v51  ;;  %v1571_v54 = vpop.f32.mrb[3].mxu0 }
 0x219   :  { %194 = vrot.lane.b32.xlu1 %v1964_v52, %s1823_s27  ;;  %v1968_v55 = vpack.c.bf16 %v188_v53, %v188_v53 }
 0x21d   :  { %244 = vrot.lane.b32.xlu1 %v1968_v55, %s1823_s27 }
 0x28b   :  { %v195_v56 = vpop.permute.xlu1 %194 }
 0x28c   :  { %v201_v57 = vsel %vm196_vm2, %v195_v56, 0 }
 0x28d   :  { %1573 = vmatpush3.bf16.xpose.msra.mxu0 %v201_v57 }
 0x28e   :  { %1578 = vmatprep.subr.bf16.mxu0 %v1821_v24 }
 0x28f   :  { %v245_v58 = vpop.permute.xlu1 %244 }
 0x290   :  { %v250_v59 = vsel %vm196_vm2, %v245_v58, 0 }
 0x294   :  { %1575 = vmatmul.mubr.msk.bf16.vlgmr.msra.gmra.mrb[4].mxu0 %vm196_vm2, %v1964_v52 }
 0x295   :  { %1579 = vmatpush3.bf16.xpose.msra.mxu0 %v250_v59  ;;  %1580 = vmatprep.mubr.msk.bf16.mxu0 %vm1822_vm1, %v1821_v24 }
 0x296   :  { %1590 = vmatprep.subr.bf16.mxu0 %v1821_v24 }
 0x29c   :  { %1581 = vmatmul.mubr.msk.bf16.vlgmr.msra.gmra.mrb[8].mxu0 %vm196_vm2, %v1968_v55 }
 0x29d   :  { %1592 = vmatprep.mubr.msk.bf16.mxu0 %vm1822_vm1, %v1821_v24 }
 0x367   :  { %v237_v60 = vpop.f32.mrb[4].mxu0 }
 0x368   :  { %v292_v62 = vmul.f32 0.088388346, %v237_v60  ;;  %v1576_v63 = vpop.f32.mrb[5].mxu0 }
 0x369   :  { %v240_v2 = vpop.f32.mrb[6].mxu0 }
 0x36a   :  { %v1577_v3 = vpop.f32.mrb[7].mxu0  ;;  %v294_v5 = vadd.f32 %v292_v62, %v1987_v61 }
 0x36c   :  { %v296_v6 = vsel %vm196_vm2, %v294_v5, -inf }
 0x36d   :  { %297 = vmax.xlane.f32.xlu0 %v296_v6 }
 0x36f   :  { %v286_v7 = vpop.f32.mrb[8].mxu0 }
 0x370   :  { %v293_v10 = vmul.f32 0.088388346, %v286_v7  ;;  %v1582_v11 = vpop.f32.mrb[9].mxu0 }
 0x371   :  { %v289_v12 = vpop.f32.mrb[10].mxu0 }
 0x372   :  { %v1583_v13 = vpop.f32.mrb[11].mxu0  ;;  %v295_v14 = vadd.f32 %v293_v10, %v1987_v61 }
 0x374   :  { %v299_v15 = vsel %vm196_vm2, %v295_v14, -inf }
 0x375   :  { %300 = vmax.xlane.f32.xlu1 %v299_v15 }
 0x386   :  { %369 = vrot.lane.b32.xlu1 %v1968_v55, %s1820_s0 }
 0x38a   :  { %419 = vrot.lane.b32.xlu1 %v1964_v52, %s1824_s2 }
 0x38e   :  { %469 = vrot.lane.b32.xlu1 %v1968_v55, %s1824_s2 }
 0x392   :  { %467 = vrot.lane.b32.xlu1 %v1968_v55, %s1825_s29 }
 0x3fa   :  { %v298_v16 = vpop.xlane.xlu0 %297 }
 0x3fb   :  { %v302_v17 = vsub.f32 %v294_v5, %v298_v16 }
 0x3fd   :  { %v304_v18 = vmul.f32 1.442695, %v302_v17 }
 0x3ff   :  { %1756 = vpow2.f32 %v304_v18 }
 0x402   :  { %v301_v19 = vpop.xlane.xlu1 %300 }
 0x403   :  { %v303_v21 = vsub.f32 %v295_v14, %v301_v19 }
 0x405   :  { %v306_v23 = vmul.f32 1.442695, %v303_v21 }
 0x406   :  { %v370_v25 = vpop.permute.xlu1 %369 }
 0x407   :  { %1758 = vpow2.f32 %v306_v23  ;;  %v375_v26 = vsel %vm325_vm3, %v370_v25, 0 }
 0x408   :  { %1591 = vmatpush3.bf16.msra.mxu0 %v375_v26 }
 0x409   :  { %v1757_v27 = vpop.eup %1756  ;;  %1602 = vmatprep.subr.bf16.mxu0 %v1821_v24 }
 0x40a   :  { %v308_v28 = vsel %vm196_vm2, %v1757_v27, 0.0  ;;  %v420_v38 = vpop.permute.xlu1 %419 }
 0x40b   :  { %309 = vadd.xlane.f32.xlu0 %v308_v28  ;;  %v425_v42 = vsel %vm196_vm2, %v420_v38, 0 }
 0x40e   :  { %v470_v41 = vpop.permute.xlu1 %469 }
 0x40f   :  { %v475_v44 = vsel %vm196_vm2, %v470_v41, 0 }
 0x411   :  { %v1759_v29 = vpop.eup %1758 }
 0x412   :  { %v311_v30 = vsel %vm196_vm2, %v1759_v29, 0.0  ;;  %v468_v46 = vpop.permute.xlu1 %467 }
 0x413   :  { %312 = vadd.xlane.f32.xlu0 %v311_v30 }
 0x429   :  { %320 = vrot.lane.b32.xlu0 %v1964_v52, %s1820_s0 }
 0x42d   :  { %417 = vrot.lane.b32.xlu0 %v1964_v52, %s1825_s29 }
 0x498   :  { %v310_v31 = vpop.xlane.xlu0 %309 }
 0x499   :  { %1760 = vrcp.f32 %v310_v31 }
 0x4a0   :  { %v313_v32 = vpop.xlane.xlu0 %312 }
 0x4a1   :  { %1762 = vrcp.f32 %v313_v32 }
 0x4a3   :  { %v1761_v33 = vpop.eup %1760 }
 0x4a4   :  { %v321_v34 = vpop.permute.xlu0 %320  ;;  %v316_v35 = vmul.f32 %v1761_v33, %v1757_v27 }
 0x4a5   :  { %v327_v36 = vsel %vm325_vm3, %v321_v34, 0 }
 0x4a6   :  { %1585 = vmatpush3.bf16.msra.mxu1 %v327_v36  ;;  %v318_v37 = vpack.c.bf16 %v316_v35, %v316_v35 }
 0x4a7   :  { %1596 = vmatprep.subr.bf16.mxu1 %v1821_v24 }
 0x4a8   :  { %v418_v45 = vpop.permute.xlu0 %417 }
 0x4a9   :  { %1587 = vmatmul.mubr.msk.bf16.vlgmr.msra.gmra.mrb[0].mxu1 %vm196_vm2, %v318_v37 }
 0x4aa   :  { %1598 = vmatprep.mubr.msk.bf16.mxu1 %vm1822_vm1, %v1821_v24 }
 0x4ab   :  { %v1763_v39 = vpop.eup %1762 }
 0x4ac   :  { %v317_v40 = vmul.f32 %v1763_v39, %v1759_v29 }
 0x4ae   :  { %v319_v43 = vpack.c.bf16 %v317_v40, %v317_v40 }
 0x4af   :  { %1597 = vmatpush3.bf16.xpose.msra.mxu1 %v425_v42 }
 0x4b0   :  { %1593 = vmatmul.mubr.msk.bf16.vlgmr.msra.gmra.mrb[12].mxu0 %vm196_vm2, %v319_v43  ;;  %1608 = vmatprep.subr.bf16.mxu1 %v1821_v24 }
 0x4b1   :  { %1603 = vmatpush3.bf16.xpose.msra.mxu0 %v475_v44  ;;  %1604 = vmatprep.mubr.msk.bf16.mxu0 %vm1822_vm1, %v1821_v24 }
 0x4b2   :  { %1614 = vmatprep.subr.bf16.mxu0 %v1821_v24 }
 0x4b6   :  { %1599 = vmatmul.mubr.msk.bf16.vlgmr.msra.gmra.mrb[4].mxu1 %vm196_vm2, %v418_v45 }
 0x4b7   :  { %1610 = vmatprep.mubr.msk.bf16.mxu1 %vm1822_vm1, %v1821_v24 }
 0x4b8   :  { %1605 = vmatmul.mubr.msk.bf16.vlgmr.msra.gmra.mrb[16].mxu0 %vm196_vm2, %v468_v46 }
 0x4b9   :  { %1616 = vmatprep.mubr.msk.bf16.mxu0 %vm1822_vm1, %v1821_v24 }
 0x57c   :  { %v2023_v47 = vpop.f32.mrb[0].mxu1 }
 0x57d   :  { %v1588_v48 = vpop.f32.mrb[1].mxu1 }
 0x57e   :  { %v366_v49 = vpop.f32.mrb[2].mxu1 }
 0x57f   :  { %v1589_v50 = vpop.f32.mrb[3].mxu1 }
 0x583   :  { %v2025_v51 = vpop.f32.mrb[12].mxu0 }
 0x584   :  { %v1594_v53 = vpop.f32.mrb[13].mxu0 }
 0x585   :  { %v414_v54 = vpop.f32.mrb[14].mxu0 }
 0x586   :  { %v1595_v56 = vpop.f32.mrb[15].mxu0 }
 0x589   :  { %v461_v57 = vpop.f32.mrb[4].mxu1 }
 0x58a   :  { %v517_v58 = vmul.f32 0.088388346, %v461_v57  ;;  %v1600_v59 = vpop.f32.mrb[5].mxu1 }
 0x58b   :  { %v464_v60 = vpop.f32.mrb[6].mxu1  ;;  %v511_v62 = vpop.f32.mrb[16].mxu0 }
 0x58c   :  { %v518_v63 = vmul.f32 0.088388346, %v511_v62  ;;  %v1601_v2 = vpop.f32.mrb[7].mxu1  ;;  %v1606_v3 = vpop.f32.mrb[17].mxu0  ;;  %v519_v5 = vadd.f32 %v517_v58, %v1987_v61 }
 0x58d   :  { %v514_v6 = vpop.f32.mrb[18].mxu0 }
 0x58e   :  { %v1607_v7 = vpop.f32.mrb[19].mxu0  ;;  %v521_v10 = vsel %vm196_vm2, %v519_v5, -inf  ;;  %v520_v11 = vadd.f32 %v518_v63, %v1987_v61 }
 0x58f   :  { %522 = vmax.xlane.f32.xlu0 %v521_v10 }
 0x590   :  { %v524_v12 = vsel %vm196_vm2, %v520_v11, -inf }
 0x591   :  { %525 = vmax.xlane.f32.xlu1 %v524_v12 }
 0x5a2   :  { %593 = vrot.lane.b32.xlu1 %v1968_v55, %s1826_s30 }
 0x5a6   :  { %643 = vrot.lane.b32.xlu1 %v1964_v52, %s1827_s12 }
 0x5aa   :  { %693 = vrot.lane.b32.xlu1 %v1968_v55, %s1827_s12 }
 0x5ae   :  { %691 = vrot.lane.b32.xlu1 %v1968_v55, %s1828_s13 }
 0x61c   :  { %v523_v13 = vpop.xlane.xlu0 %522 }
 0x61d   :  { %v527_v14 = vsub.f32 %v519_v5, %v523_v13 }
 0x61e   :  { %v526_v15 = vpop.xlane.xlu1 %525 }
 0x61f   :  { %v529_v16 = vmul.f32 1.442695, %v527_v14  ;;  %v528_v17 = vsub.f32 %v520_v11, %v526_v15 }
 0x621   :  { %1764 = vpow2.f32 %v529_v16  ;;  %v531_v18 = vmul.f32 1.442695, %v528_v17 }
 0x622   :  { %v594_v19 = vpop.permute.xlu1 %593 }
 0x623   :  { %1766 = vpow2.f32 %v531_v18  ;;  %v599_v21 = vsel %vm325_vm3, %v594_v19, 0 }
 0x624   :  { %1615 = vmatpush3.bf16.msra.mxu0 %v599_v21 }
 0x625   :  { %1626 = vmatprep.subr.bf16.mxu0 %v1821_v24 }
 0x626   :  { %v644_v33 = vpop.permute.xlu1 %643 }
 0x627   :  { %v649_v39 = vsel %vm196_vm2, %v644_v33, 0 }
 0x62a   :  { %v694_v38 = vpop.permute.xlu1 %693 }
 0x62b   :  { %v1765_v23 = vpop.eup %1764  ;;  %v699_v41 = vsel %vm196_vm2, %v694_v38, 0 }
 0x62c   :  { %v533_v25 = vsel %vm196_vm2, %v1765_v23, 0.0 }
 0x62d   :  { %v1767_v26 = vpop.eup %1766  ;;  %534 = vadd.xlane.f32.xlu0 %v533_v25 }
 0x62e   :  { %v536_v27 = vsel %vm196_vm2, %v1767_v26, 0.0  ;;  %v692_v43 = vpop.permute.xlu1 %691 }
 0x631   :  { %537 = vadd.xlane.f32.xlu0 %v536_v27 }
 0x647   :  { %545 = vrot.lane.b32.xlu0 %v1964_v52, %s1826_s30 }
 0x64b   :  { %641 = vrot.lane.b32.xlu0 %v1964_v52, %s1828_s13 }
 0x6ba   :  { %v535_v28 = vpop.xlane.xlu0 %534 }
 0x6bb   :  { %1768 = vrcp.f32 %v535_v28 }
 0x6be   :  { %v538_v29 = vpop.xlane.xlu0 %537 }
 0x6bf   :  { %1770 = vrcp.f32 %v538_v29 }
 0x6c2   :  { %v546_v30 = vpop.permute.xlu0 %545 }
 0x6c3   :  { %v551_v31 = vsel %vm325_vm3, %v546_v30, 0 }
 0x6c4   :  { %1609 = vmatpush3.bf16.msra.mxu1 %v551_v31 }
 0x6c5   :  { %v1769_v32 = vpop.eup %1768  ;;  %1620 = vmatprep.subr.bf16.mxu1 %v1821_v24 }
 0x6c6   :  { %v541_v34 = vmul.f32 %v1769_v32, %v1765_v23  ;;  %v642_v42 = vpop.permute.xlu0 %641 }
 0x6c8   :  { %v543_v35 = vpack.c.bf16 %v541_v34, %v541_v34 }
 0x6c9   :  { %v1771_v36 = vpop.eup %1770 }
 0x6ca   :  { %v542_v37 = vmul.f32 %v1771_v36, %v1767_v26  ;;  %1611 = vmatmul.mubr.msk.bf16.vlgmr.msra.gmra.mrb[8].mxu1 %vm196_vm2, %v543_v35 }
 0x6cb   :  { %1622 = vmatprep.mubr.msk.bf16.mxu1 %vm1822_vm1, %v1821_v24 }
 0x6cc   :  { %v544_v40 = vpack.c.bf16 %v542_v37, %v542_v37 }
 0x6cd   :  { %1621 = vmatpush3.bf16.xpose.msra.mxu1 %v649_v39 }
 0x6ce   :  { %1617 = vmatmul.mubr.msk.bf16.vlgmr.msra.gmra.mrb[20].mxu0 %vm196_vm2, %v544_v40  ;;  %1632 = vmatprep.subr.bf16.mxu1 %v1821_v24 }
 0x6cf   :  { %1627 = vmatpush3.bf16.xpose.msra.mxu0 %v699_v41  ;;  %1628 = vmatprep.mubr.msk.bf16.mxu0 %vm1822_vm1, %v1821_v24 }
 0x6d0   :  { %1638 = vmatprep.subr.bf16.mxu0 %v1821_v24 }
 0x6d4   :  { %1623 = vmatmul.mubr.msk.bf16.vlgmr.msra.gmra.mrb[12].mxu1 %vm196_vm2, %v642_v42 }
 0x6d5   :  { %1634 = vmatprep.mubr.msk.bf16.mxu1 %vm1822_vm1, %v1821_v24 }
 0x6d6   :  { %1629 = vmatmul.mubr.msk.bf16.vlgmr.msra.gmra.mrb[24].mxu0 %vm196_vm2, %v692_v43 }
 0x6d7   :  { %1640 = vmatprep.mubr.msk.bf16.mxu0 %vm1822_vm1, %v1821_v24 }
 0x79d   :  { %v2059_v44 = vpop.f32.mrb[8].mxu1 }
 0x79e   :  { %v1612_v45 = vpop.f32.mrb[9].mxu1 }
 0x79f   :  { %v590_v46 = vpop.f32.mrb[10].mxu1 }
 0x7a0   :  { %v1613_v48 = vpop.f32.mrb[11].mxu1 }
 0x7a1   :  { %v2061_v49 = vpop.f32.mrb[20].mxu0 }
 0x7a2   :  { %v1723_v50 = vpack.i.bf16 %v2061_v49, %v2059_v44  ;;  %v1618_v53 = vpop.f32.mrb[21].mxu0 }
 0x7a3   :  { %v638_v54 = vpop.f32.mrb[22].mxu0 }
 0x7a4   :  { %v1619_v56 = vpop.f32.mrb[23].mxu0 }
 0x7a7   :  { %v685_v57 = vpop.f32.mrb[12].mxu1 }
 0x7a8   :  { %v741_v58 = vmul.f32 0.088388346, %v685_v57  ;;  %v1624_v59 = vpop.f32.mrb[13].mxu1 }
 0x7a9   :  { %v688_v60 = vpop.f32.mrb[14].mxu1  ;;  %v735_v62 = vpop.f32.mrb[24].mxu0 }
 0x7aa   :  { %v742_v63 = vmul.f32 0.088388346, %v735_v62  ;;  %v1625_v2 = vpop.f32.mrb[15].mxu1  ;;  %v1630_v3 = vpop.f32.mrb[25].mxu0  ;;  %v743_v5 = vadd.f32 %v741_v58, %v1987_v61 }
 0x7ab   :  { %v738_v6 = vpop.f32.mrb[26].mxu0 }
 0x7ac   :  { %v1631_v7 = vpop.f32.mrb[27].mxu0  ;;  %v745_v10 = vsel %vm196_vm2, %v743_v5, -inf  ;;  %v744_v11 = vadd.f32 %v742_v63, %v1987_v61 }
 0x7ad   :  { %746 = vmax.xlane.f32.xlu0 %v745_v10 }
 0x7ae   :  { %v748_v12 = vsel %vm196_vm2, %v744_v11, -inf }
 0x7af   :  { %749 = vmax.xlane.f32.xlu1 %v748_v12 }
 0x7c0   :  { %817 = vrot.lane.b32.xlu1 %v1968_v55, %s1829_s14 }
 0x7c4   :  { %867 = vrot.lane.b32.xlu1 %v1964_v52, %s1830_s15 }
 0x7c8   :  { %917 = vrot.lane.b32.xlu1 %v1968_v55, %s1830_s15 }
 0x7cc   :  { %915 = vrot.lane.b32.xlu1 %v1968_v55, %s1831_s16 }
 0x83a   :  { %v747_v13 = vpop.xlane.xlu0 %746 }
 0x83b   :  { %v751_v14 = vsub.f32 %v743_v5, %v747_v13 }
 0x83c   :  { %v750_v15 = vpop.xlane.xlu1 %749 }
 0x83d   :  { %v753_v16 = vmul.f32 1.442695, %v751_v14  ;;  %v752_v17 = vsub.f32 %v744_v11, %v750_v15 }
 0x83f   :  { %1772 = vpow2.f32 %v753_v16  ;;  %v755_v18 = vmul.f32 1.442695, %v752_v17 }
 0x840   :  { %v818_v19 = vpop.permute.xlu1 %817 }
 0x841   :  { %1774 = vpow2.f32 %v755_v18  ;;  %v823_v21 = vsel %vm325_vm3, %v818_v19, 0 }
 0x842   :  { %1639 = vmatpush3.bf16.msra.mxu0 %v823_v21 }
 0x843   :  { %1650 = vmatprep.subr.bf16.mxu0 %v1821_v24 }
 0x844   :  { %v868_v33 = vpop.permute.xlu1 %867 }
 0x845   :  { %v873_v39 = vsel %vm196_vm2, %v868_v33, 0 }
 0x848   :  { %v918_v38 = vpop.permute.xlu1 %917 }
 0x849   :  { %v1773_v23 = vpop.eup %1772  ;;  %v923_v41 = vsel %vm196_vm2, %v918_v38, 0 }
 0x84a   :  { %v757_v25 = vsel %vm196_vm2, %v1773_v23, 0.0 }
 0x84b   :  { %v1775_v26 = vpop.eup %1774  ;;  %758 = vadd.xlane.f32.xlu0 %v757_v25 }
 0x84c   :  { %v760_v27 = vsel %vm196_vm2, %v1775_v26, 0.0  ;;  %v916_v43 = vpop.permute.xlu1 %915 }
 0x84f   :  { %761 = vadd.xlane.f32.xlu0 %v760_v27 }
 0x865   :  { %769 = vrot.lane.b32.xlu0 %v1964_v52, %s1829_s14 }
 0x869   :  { %865 = vrot.lane.b32.xlu0 %v1964_v52, %s1831_s16 }
 0x8d8   :  { %v759_v28 = vpop.xlane.xlu0 %758 }
 0x8d9   :  { %1776 = vrcp.f32 %v759_v28 }
 0x8dc   :  { %v762_v29 = vpop.xlane.xlu0 %761 }
 0x8dd   :  { %1778 = vrcp.f32 %v762_v29 }
 0x8e0   :  { %v770_v30 = vpop.permute.xlu0 %769 }
 0x8e1   :  { %v775_v31 = vsel %vm325_vm3, %v770_v30, 0 }
 0x8e2   :  { %1633 = vmatpush3.bf16.msra.mxu1 %v775_v31 }
 0x8e3   :  { %v1777_v32 = vpop.eup %1776  ;;  %1644 = vmatprep.subr.bf16.mxu1 %v1821_v24 }
 0x8e4   :  { %v765_v34 = vmul.f32 %v1777_v32, %v1773_v23  ;;  %v866_v42 = vpop.permute.xlu0 %865 }
 0x8e6   :  { %v767_v35 = vpack.c.bf16 %v765_v34, %v765_v34 }
 0x8e7   :  { %v1779_v36 = vpop.eup %1778 }
 0x8e8   :  { %v766_v37 = vmul.f32 %v1779_v36, %v1775_v26  ;;  %1635 = vmatmul.mubr.msk.bf16.vlgmr.msra.gmra.mrb[16].mxu1 %vm196_vm2, %v767_v35  ;;  %v1740_v35 = vld [vmem:[%s2232_s5] sm:$0xff]   ;;  %v1741_v36 = vld [vmem:[%s2232_s5 + $0x8] sm:$0xff]  }
 0x8e9   :  { %1646 = vmatprep.mubr.msk.bf16.mxu1 %vm1822_vm1, %v1821_v24 }
 0x8ea   :  { %v768_v40 = vpack.c.bf16 %v766_v37, %v766_v37 }
 0x8eb   :  { %1645 = vmatpush3.bf16.xpose.msra.mxu1 %v873_v39 }
 0x8ec   :  { %1641 = vmatmul.mubr.msk.bf16.vlgmr.msra.gmra.mrb[28].mxu0 %vm196_vm2, %v768_v40  ;;  %1656 = vmatprep.subr.bf16.mxu1 %v1821_v24 }
 0x8ed   :  { %1651 = vmatpush3.bf16.xpose.msra.mxu0 %v923_v41  ;;  %1652 = vmatprep.mubr.msk.bf16.mxu0 %vm1822_vm1, %v1821_v24 }
 0x8ee   :  { %1662 = vmatprep.subr.bf16.mxu0 %v1821_v24 }
 0x8f2   :  { %1647 = vmatmul.mubr.msk.bf16.vlgmr.msra.gmra.mrb[20].mxu1 %vm196_vm2, %v866_v42 }
 0x8f3   :  { %1658 = vmatprep.mubr.msk.bf16.mxu1 %vm1822_vm1, %v1821_v24 }
 0x8f4   :  { %1653 = vmatmul.mubr.msk.bf16.vlgmr.msra.gmra.mrb[32].mxu0 %vm196_vm2, %v916_v43 }
 0x8f5   :  { %1664 = vmatprep.mubr.msk.bf16.mxu0 %vm1822_vm1, %v1821_v24 }
 0x9bb   :  { %v811_v45 = vpop.f32.mrb[16].mxu1 }
 0x9bc   :  { %v1636_v46 = vpop.f32.mrb[17].mxu1 }
 0x9bd   :  { %v814_v48 = vpop.f32.mrb[18].mxu1 }
 0x9be   :  { %v1637_v53 = vpop.f32.mrb[19].mxu1 }
 0x9bf   :  { %v859_v54 = vpop.f32.mrb[28].mxu0 }
 0x9c0   :  { %v1728_v56 = vpack.i.bf16 %v859_v54, %v811_v45  ;;  %v1642_v57 = vpop.f32.mrb[29].mxu0 }
 0x9c1   :  { %v862_v58 = vpop.f32.mrb[30].mxu0 }
 0x9c2   :  { %v1643_v59 = vpop.f32.mrb[31].mxu0 }
 0x9c5   :  { %v909_v60 = vpop.f32.mrb[20].mxu1 }
 0x9c6   :  { %v965_v62 = vmul.f32 0.088388346, %v909_v60  ;;  %v1648_v63 = vpop.f32.mrb[21].mxu1 }
 0x9c7   :  { %v912_v2 = vpop.f32.mrb[22].mxu1  ;;  %v959_v3 = vpop.f32.mrb[32].mxu0 }
 0x9c8   :  { %v966_v5 = vmul.f32 0.088388346, %v959_v3  ;;  %v1649_v6 = vpop.f32.mrb[23].mxu1  ;;  %v1654_v7 = vpop.f32.mrb[33].mxu0  ;;  %v967_v10 = vadd.f32 %v965_v62, %v1987_v61 }
 0x9c9   :  { %v962_v11 = vpop.f32.mrb[34].mxu0 }
 0x9ca   :  { %v1655_v12 = vpop.f32.mrb[35].mxu0  ;;  %v969_v13 = vsel %vm196_vm2, %v967_v10, -inf  ;;  %v968_v14 = vadd.f32 %v966_v5, %v1987_v61  ;;  %v1497_v11 = vld [vmem:[%s2233_s6] ss:$0 sm:$0xff]  ;;  %s1836_s6 = smov 32  }
 0x9cb   :  { %970 = vmax.xlane.f32.xlu0 %v969_v13 }
 0x9cc   :  { %v972_v15 = vsel %vm196_vm2, %v968_v14, -inf }
 0x9cd   :  { %973 = vmax.xlane.f32.xlu1 %v972_v15 }
 0x9de   :  { %1041 = vrot.lane.b32.xlu1 %v1968_v55, %s1832_s17 }
 0x9e2   :  { %1724 = vrot.lane.b32.xlu1 %v1723_v50, %s1833_s18 }
 0x9e6   :  { %1729 = vrot.lane.b32.xlu1 %v1728_v56, %s1834_s19 }
 0xa58   :  { %v971_v16 = vpop.xlane.xlu0 %970 }
 0xa59   :  { %v975_v17 = vsub.f32 %v967_v10, %v971_v16 }
 0xa5a   :  { %v974_v18 = vpop.xlane.xlu1 %973 }
 0xa5b   :  { %v977_v19 = vmul.f32 1.442695, %v975_v17  ;;  %v976_v61 = vsub.f32 %v968_v14, %v974_v18  ;;  %v1196_v14 = vrot.slane %v1932_v20, %v1919_v8 }
 0xa5d   :  { %1780 = vpow2.f32 %v977_v19  ;;  %v979_v21 = vmul.f32 1.442695, %v976_v61 }
 0xa5e   :  { %v1042_v23 = vpop.permute.xlu1 %1041 }
 0xa5f   :  { %1782 = vpow2.f32 %v979_v21  ;;  %v1047_v25 = vsel %vm325_vm3, %v1042_v23, 0 }
 0xa60   :  { %1663 = vmatpush3.bf16.msra.mxu0 %v1047_v25 }
 0xa61   :  { %1676 = vmatprep.subr.bf16.mxu0 %v1821_v24 }
 0xa62   :  { %v1725_v48 = vpop.permute.xlu1 %1724 }
 0xa63   :  { %v1727_v54 = vunpack.i.h.bf16 %v1725_v48  ;;  %v1726_v56 = vunpack.i.l.bf16 %v1725_v48 }
 0xa65   :  { %v1114_v60 = vsel %vm196_vm2, %v2025_v51, %v1727_v54  ;;  %v1113_v62 = vsel %vm196_vm2, %v2023_v47, %v1726_v56  ;;  %v1192_v51 = vrot.slane %v1916_v4, %v1919_v8 }
 0xa66   :  { %v1730_v53 = vpop.permute.xlu1 %1729 }
 0xa67   :  { %v1781_v55 = vpop.eup %1780  ;;  %v1732_v57 = vunpack.i.h.bf16 %v1730_v53  ;;  %v1731_v58 = vunpack.i.l.bf16 %v1730_v53 }
 0xa68   :  { %v981_v44 = vsel %vm196_vm2, %v1781_v55, 0.0 }
 0xa69   :  { %v1783_v49 = vpop.eup %1782  ;;  %982 = vadd.xlane.f32.xlu0 %v981_v44  ;;  %v1116_v3 = vsel %vm1115_vm4, %v1113_v62, %v1731_v58  ;;  %v1117_v5 = vsel %vm1115_vm4, %v1114_v60, %v1732_v57  ;;  %v1744_v57 = vld [vmem:[%s2236_s9] sm:$0xff]   ;;  %v1745_v58 = vld [vmem:[%s2236_s9 + $0x8] sm:$0xff]  }
 0xa6a   :  { %v984_v50 = vsel %vm196_vm2, %v1783_v49, 0.0  ;;  %v1748_v60 = vld [vmem:[%s2236_s9 + $0x20] sm:$0xff]   ;;  %v1749_v62 = vld [vmem:[%s2236_s9 + $0x28] sm:$0xff]  }
 0xa6d   :  { %985 = vadd.xlane.f32.xlu0 %v984_v50 }
 0xa83   :  { %993 = vrot.lane.b32.xlu0 %v1964_v52, %s1832_s17 }
 0xaf6   :  { %v983_v26 = vpop.xlane.xlu0 %982 }
 0xaf7   :  { %1784 = vrcp.f32 %v983_v26 }
 0xafa   :  { %v986_v27 = vpop.xlane.xlu0 %985 }
 0xafb   :  { %1786 = vrcp.f32 %v986_v27 }
 0xafe   :  { %v994_v28 = vpop.permute.xlu0 %993 }
 0xaff   :  { %v999_v29 = vsel %vm325_vm3, %v994_v28, 0 }
 0xb00   :  { %1657 = vmatpush3.bf16.msra.mxu1 %v999_v29 }
 0xb01   :  { %v1785_v30 = vpop.eup %1784  ;;  %1668 = vmatprep.subr.bf16.mxu1 %v1821_v24 }
 0xb02   :  { %v989_v31 = vmul.f32 %v1785_v30, %v1781_v55 }
 0xb04   :  { %v991_v32 = vpack.c.bf16 %v989_v31, %v989_v31 }
 0xb05   :  { %v1787_v33 = vpop.eup %1786 }
 0xb06   :  { %v990_v34 = vmul.f32 %v1787_v33, %v1783_v49  ;;  %1659 = vmatmul.mubr.msk.bf16.vlgmr.msra.gmra.mrb[24].mxu1 %vm196_vm2, %v991_v32 }
 0xb07   :  { %1672 = vmatprep.mubr.msk.bf16.mxu1 %vm1822_vm1, %v1821_v24  ;;  %1669 = vmatpush3.bf16.msra.mxu1 %v1740_v35 }
 0xb08   :  { %v992_v52 = vpack.c.bf16 %v990_v34, %v990_v34  ;;  %1670 = vmatprep.subr.bf16.mxu1 %v1821_v24 }
 0xb0a   :  { %1665 = vmatmul.mubr.msk.bf16.vlgmr.msra.gmra.mrb[36].mxu0 %vm196_vm2, %v992_v52 }
 0xb0b   :  { %1680 = vmatprep.mubr.msk.bf16.mxu0 %vm1822_vm1, %v1821_v24  ;;  %1671 = vmatpush3.bf16.msra.mxu1 %v1741_v36 }
 0xb0c   :  { %1684 = vmatprep.subr.bf16.mxu1 %v1821_v24 }
 0xbd9   :  { %v1035_v37 = vpop.f32.mrb[24].mxu1 }
 0xbda   :  { %v1660_v38 = vpop.f32.mrb[25].mxu1 }
 0xbdb   :  { %v1038_v39 = vpop.f32.mrb[26].mxu1 }
 0xbdc   :  { %v1661_v40 = vpop.f32.mrb[27].mxu1 }
 0xbdd   :  { %v1083_v41 = vpop.f32.mrb[36].mxu0 }
 0xbde   :  { %v1733_v42 = vpack.i.bf16 %v1083_v41, %v1035_v37  ;;  %v1666_v43 = vpop.f32.mrb[37].mxu0 }
 0xbdf   :  { %v1086_v45 = vpop.f32.mrb[38].mxu0 }
 0xbe0   :  { %1734 = vrot.lane.b32.xlu0 %v1733_v42, %s1835_s1  ;;  %v1667_v46 = vpop.f32.mrb[39].mxu0  ;;  %s1837_s1 = smov [#allocation2]  }
 0xbe1   :  { %s1465_s5 = sshll.u32 %s1837_s1, 4  ;;  %s1466_s5 = int_to_ptr.vmem [resolvable:$true] %s1465_s5 }
 0xbe2   :  { %p1801_p1 = scmp.lt.s32.totalorder %s1466_s5, %s1466_s5 }
 0xc52   :  { %v1735_v59 = vpop.permute.xlu0 %1734 }
 0xc53   :  { %v1737_v63 = vunpack.i.h.bf16 %v1735_v59  ;;  %v1736_v2 = vunpack.i.l.bf16 %v1735_v59  ;;  %v1747_v59 = vld [vmem:[%s2236_s9 + $0x18] sm:$0xff]  }
 0xc55   :  { %v1120_v6 = vsel %vm1118_vm5, %v1117_v5, %v1737_v63  ;;  %v1119_v7 = vsel %vm1118_vm5, %v1116_v3, %v1736_v2  ;;  %v1750_v63 = vld [vmem:[%s2236_s9 + $0x30] sm:$0xff]   ;;  %v1751_v2 = vld [vmem:[%s2236_s9 + $0x38] sm:$0xff]   ;;  %v1501_v3 = vld [vmem:[%s2235_s8] ss:$0 sm:$0xff] }
 0xc56   :  { %v1121_v10 = vpack.c.bf16 %v1120_v6, %v1119_v7 }
 0xc58   :  { %1673 = vmatmul.mubr.msk.bf16.vlgmr.msra.gmra.mrb[28].mxu1 %vm63_vm0, %v1121_v10 }
 0xc59   :  { %1700 = vmatprep.mubr.msk.bf16.mxu1 %vm1822_vm1, %v1821_v24  ;;  %1685 = vmatpush3.bf16.msra.mxu1 %v1744_v57 }
 0xc5a   :  { %1686 = vmatprep.subr.bf16.mxu1 %v1821_v24 }
 0xc5d   :  { %1687 = vmatpush3.bf16.msra.mxu1 %v1745_v58 }
 0xc5e   :  { %1688 = vmatprep.subr.bf16.mxu1 %v1821_v24 }
 0xd2b   :  { %v1182_v47 = vpop.f32.mrb[28].mxu1 }
 0xd2c   :  { %v1183_v12 = vadd.f32 %v1497_v11, %v1182_v47  ;;  %v1674_v13 = vpop.f32.mrb[29].mxu1 }
 0xd2d   :  { %v1185_v15 = vpop.f32.mrb[30].mxu1 }
 0xd2e   :  { %v1199_v16 = vmul.f32 %v1192_v51, %v1183_v12  ;;  %v1186_v17 = vadd.f32 %v1497_v11, %v1185_v15  ;;  %v1675_v18 = vpop.f32.mrb[31].mxu1 }
 0xd30   :  { %v2142_v19 = vadd.f32 %v1199_v16, %v1902_v0  ;;  %v1200_v61 = vmul.f32 %v1196_v14, %v1186_v17 }
 0xd32   :  { %v2145_v21 = vadd.f32 %v1200_v61, %v1907_v1  ;;  %v1203_v23 = vsel %vm63_vm0, %v2142_v19, 0.0 }
 0xd33   :  { %1204 = vadd.xlane.f32.xlu1 %v1203_v23 }
 0xd34   :  { %v1206_v25 = vsel %vm63_vm0, %v2145_v21, 0.0 }
 0xd35   :  { %1207 = vadd.xlane.f32.xlu0 %v1206_v25 }
 0xd44   :  { %57 = vrot.lane.b32.xlu1 %v1916_v4, %s1823_s27 }
 0xd48   :  { %1229 = vrot.lane.b32.xlu1 %v1922_v9, %s1836_s6  ;;  %v1742_v9 = vld [vmem:[%s2234_s7] sm:$0xff]  }
 0xd49   :  { %1677 = vmatpush3.bf16.msra.mxu0 %v1742_v9 }
 0xd4a   :  { %1678 = vmatprep.subr.bf16.mxu0 %v1821_v24 }
 0xd4c   :  { %1231 = vrot.lane.b32.xlu1 %v1936_v22, %s1836_s6  ;;  %v1743_v22 = vld [vmem:[%s2234_s7 + $0x8] sm:$0xff]  }
 0xd4d   :  { %1679 = vmatpush3.bf16.msra.mxu0 %v1743_v22 }
 0xd50   :  { %1448 = vrot.lane.b32.xlu1 %v1192_v51, %s1823_s27 }
 0xdc0   :  { %v1205_v0 = vpop.xlane.xlu1 %1204 }
 0xdc1   :  { %v1209_v1 = vmul.f32 0.03125, %v1205_v0 }
 0xdc2   :  { %v1208_v55 = vpop.xlane.xlu0 %1207 }
 0xdc3   :  { %v1211_v44 = vsub.f32 %v2142_v19, %v1209_v1  ;;  %v1210_v49 = vmul.f32 0.03125, %v1208_v55 }
 0xdc4   :  { %v58_v34 = vpop.permute.xlu1 %57 }
 0xdc5   :  { %v1212_v50 = vsub.f32 %v2145_v21, %v1210_v49  ;;  %v1213_v26 = vmul.f32 %v1211_v44, %v1211_v44  ;;  %v61_v39 = vrot.slane %v58_v34, 1 }
 0xdc7   :  { %v1215_v27 = vsel %vm63_vm0, %v1213_v26, 0.0  ;;  %v1214_v28 = vmul.f32 %v1212_v50, %v1212_v50  ;;  %v1240_v46 = vrot.slane %v61_v39, %v1919_v8 }
 0xdc8   :  { %1216 = vadd.xlane.f32.xlu0 %v1215_v27  ;;  %v1230_v52 = vpop.permute.xlu1 %1229  ;;  %v1505_v27 = vld [vmem:[%s2237_s10] ss:$0 sm:$0xff]  ;;  %s1796_s10 = scalar_lea.vmem %s1466_s5, 256 }
 0xdc9   :  { %v1218_v4 = vsel %vm63_vm0, %v1214_v28, 0.0  ;;  %p1797_p0 = scmp.ne.s32.totalorder %s1466_s5, %s1796_s10  ;;  %p1802_p2 = scmp.lt.s32.totalorder %s1796_s10, %s1796_s10 }
 0xdcb   :  { %p1803_p3 = por %p1802_p2, %p1801_p1 }
 0xdcc   :  { %1219 = vadd.xlane.f32.xlu0 %v1218_v4  ;;  %v1232_v41 = vpop.permute.xlu1 %1231 }
 0xdcd   :  { %p1804_p4 = pnand %p1803_p3, %p1797_p0 }
 0xdd0   :  { %v1449_v4 = vpop.permute.xlu1 %1448 }
 0xde2   :  { %59 = vrot.lane.b32.xlu0 %v1932_v20, %s1823_s27 }
 0xde6   :  { %1450 = vrot.lane.b32.xlu0 %v1196_v14, %s1823_s27 }
 0xe55   :  { %v1217_v29 = vpop.xlane.xlu0 %1216 }
 0xe56   :  { %v1221_v30 = vmul.f32 0.03125, %v1217_v29 }
 0xe58   :  { %v1223_v31 = vadd.f32 1e-06, %v1221_v30 }
 0xe59   :  { %v1220_v32 = vpop.xlane.xlu0 %1219 }
 0xe5a   :  { %1788 = vrsqrt.f32 %v1223_v31  ;;  %v1222_v20 = vmul.f32 0.03125, %v1220_v32 }
 0xe5c   :  { %v1224_v33 = vadd.f32 1e-06, %v1222_v20 }
 0xe5d   :  { %v60_v35 = vpop.permute.xlu0 %59 }
 0xe5e   :  { %1790 = vrsqrt.f32 %v1224_v33  ;;  %v62_v38 = vrot.slane %v60_v35, 1 }
 0xe60   :  { %v1244_v43 = vrot.slane %v62_v38, %v1919_v8  ;;  %v1746_v8 = vld [vmem:[%s2236_s9 + $0x10] sm:$0xff]  }
 0xe61   :  { %1689 = vmatpush3.bf16.msra.mxu1 %v1746_v8  ;;  %v1451_v30 = vpop.permute.xlu0 %1450 }
 0xe62   :  { %1690 = vmatprep.subr.bf16.mxu1 %v1821_v24 }
 0xe64   :  { %v1789_v36 = vpop.eup %1788 }
 0xe65   :  { %v1227_v37 = vmul.f32 %v1789_v36, %v1211_v44  ;;  %1691 = vmatpush3.bf16.msra.mxu1 %v1747_v59 }
 0xe66   :  { %1692 = vmatprep.subr.bf16.mxu1 %v1821_v24 }
 0xe67   :  { %v1235_v42 = vmul.f32 %v1230_v52, %v1227_v37 }
 0xe68   :  { %v1791_v40 = vpop.eup %1790 }
 0xe69   :  { %v1228_v45 = vmul.f32 %v1791_v40, %v1212_v50  ;;  %v1247_v53 = vadd.f32 %v1240_v46, %v1235_v42  ;;  %1693 = vmatpush3.bf16.msra.mxu1 %v1748_v60 }
 0xe6a   :  { %1694 = vmatprep.subr.bf16.mxu1 %v1821_v24 }
 0xe6b   :  { %v1236_v48 = vmul.f32 %v1232_v41, %v1228_v45 }
 0xe6d   :  { %v1248_v54 = vadd.f32 %v1244_v43, %v1236_v48  ;;  %1695 = vmatpush3.bf16.msra.mxu1 %v1749_v62 }
 0xe6e   :  { %1696 = vmatprep.subr.bf16.mxu1 %v1821_v24 }
 0xe6f   :  { %v1249_v56 = vpack.c.bf16 %v1248_v54, %v1247_v53 }
 0xe71   :  { %1681 = vmatmul.mubr.msk.bf16.vlgmr.msra.gmra.mrb[40].mxu0 %vm63_vm0, %v1249_v56  ;;  %1697 = vmatpush3.bf16.msra.mxu1 %v1750_v63 }
 0xe72   :  { %1698 = vmatprep.subr.bf16.mxu1 %v1821_v24 }
 0xe75   :  { %1699 = vmatpush3.bf16.msra.mxu1 %v1751_v2 }
 0xf44   :  { %v1310_v5 = vpop.f32.mrb[40].mxu0 }
 0xf45   :  { %v1311_v6 = vadd.f32 %v1501_v3, %v1310_v5  ;;  %v1682_v7 = vpop.f32.mrb[41].mxu0 }
 0xf46   :  { %v1313_v10 = vpop.f32.mrb[42].mxu0 }
 0xf47   :  { %v1319_v11 = vmul.f32 0.044715, %v1311_v6  ;;  %v1314_v51 = vadd.f32 %v1501_v3, %v1313_v10  ;;  %v1683_v47 = vpop.f32.mrb[43].mxu0  ;;  %v1317_v1 = vmul.f32 0.5, %v1311_v6 }
 0xf49   :  { %v1321_v12 = vmul.f32 %v1319_v11, %v1311_v6  ;;  %v1320_v13 = vmul.f32 0.044715, %v1314_v51  ;;  %v1318_v55 = vmul.f32 0.5, %v1314_v51 }
 0xf4b   :  { %v1323_v14 = vmul.f32 %v1321_v12, %v1311_v6  ;;  %v1322_v15 = vmul.f32 %v1320_v13, %v1314_v51 }
 0xf4d   :  { %v1325_v16 = vadd.f32 %v1323_v14, %v1311_v6  ;;  %v1324_v17 = vmul.f32 %v1322_v15, %v1314_v51 }
 0xf4f   :  { %v1327_v18 = vmul.f32 0.7978846, %v1325_v16  ;;  %v1326_v24 = vadd.f32 %v1324_v17, %v1314_v51 }
 0xf51   :  { %1792 = vtanh.f32 %v1327_v18  ;;  %v1328_v61 = vmul.f32 0.7978846, %v1326_v24 }
 0xf53   :  { %1794 = vtanh.f32 %v1328_v61 }
 0xf5b   :  { %v1793_v23 = vpop.eup %1792 }
 0xf5c   :  { %v1331_v25 = vadd.f32 1.0, %v1793_v23 }
 0xf5d   :  { %v1795_v0 = vpop.eup %1794 }
 0xf5e   :  { %v1332_v44 = vadd.f32 1.0, %v1795_v0  ;;  %v1333_v49 = vmul.f32 %v1331_v25, %v1317_v1 }
 0xf60   :  { %v1334_v50 = vmul.f32 %v1332_v44, %v1318_v55 }
 0xf62   :  { %v1335_v26 = vpack.c.bf16 %v1334_v50, %v1333_v49 }
 0xf64   :  { %1701 = vmatmul.mubr.bf16.vlgmr.msra.gmra.mrb[32].mxu1 %v1335_v26 }
0x1037   :  { %v1441_v28 = vpop.f32.mrb[32].mxu1 }
0x1038   :  { %v1442_v9 = vadd.f32 %v1505_v27, %v1441_v28  ;;  %v1702_v22 = vpop.f32.mrb[33].mxu1 }
0x1039   :  { %v1444_v29 = vpop.f32.mrb[34].mxu1 }
0x103a   :  { %v1454_v31 = vmul.f32 %v1449_v4, %v1442_v9  ;;  %v1445_v32 = vadd.f32 %v1505_v27, %v1444_v29  ;;  %v1703_v20 = vpop.f32.mrb[35].mxu1 }
0x103c   :  { %v1456_v33 = vadd.f32 %v1454_v31, %v2142_v19  ;;  %v1455_v34 = vmul.f32 %v1451_v30, %v1445_v32 }
0x103e   :  { %1458 = vst.msk [vmem:[#allocation2] sm:$0xff] %vm63_vm0, %v1456_v33  ;;  %v1457_v52 = vadd.f32 %v1455_v34, %v2145_v21 }
0x1040   :  { %1459 = vst.msk [vmem:[#allocation2 + $0x8] sm:$0xff] %vm63_vm0, %v1457_v52 }
0x1041   :  { %1807 = shalt.err (!%p1804_p4)
}
0x1042   :  { %s1808_s24 = scalar_lea.hbm %s2238_s11, 256 }
0x1043   :  { %p1809_p5 = scmp.ne.s32.totalorder %s2238_s11, %s1808_s24  ;;  %p1812_p6 = scmp.lt.u32.totalorder %s1808_s24, %s2238_s11 }
0x1045   :  { %p1814_p7 = pnand %p1812_p6, %p1809_p5 }
0x1047   :  { %1817 = shalt.err (!%p1814_p7)
}
0x1048   :  { %s1838_s27 = smov 128  }
0x1049   :  { %1471 = dma.vmem_to_hbm [thread:$0]  %s1466_s5, 256, %s2238_s11, [#allocation3], %s1838_s27, %s1838_s27, %s1833_s18  }
0x104a   :  { %1818 = dma.done.wait [#allocation3], 256  }
0x104b   :  { %1819 = vsyncadd [#allocation3], 4294967040 }
0x104c   :  { %1475 = vsyncpa [#allocation3], 1 }

</bundles_post_ra>
